<compile_context>
chip_gen: v5e
topology: v5e:2x2
jax: 0.10.0
libtpu: 0.0.40
codegen_flags: <defaults>
</compile_context>

<pallas_src>
import functools

import jax
import jax.numpy as jnp
from jax.experimental import pallas as pl
from jax.experimental.pallas import tpu as pltpu

HIDDEN_SIZE = 256


def _round_up(x, m):
    return ((x + m - 1) // m) * m


def _critic_kernel(x_ref, w1_ref, b1_ref, w2_ref, b2_ref, w3_ref, b3_ref, o_ref):
    """Fused 3-layer MLP: relu(x@W1+b1) -> relu(.@W2+b2) -> .@W3+b3 (no out act)."""
    # x / W arrive as bf16 (native MXU path, half the HBM bytes); accumulate in
    # f32 on the MXU, do bias-add / ReLU in f32 on the VPU.
    h1 = jnp.dot(x_ref[...], w1_ref[...], preferred_element_type=jnp.float32)
    h1 = jnp.maximum(h1 + b1_ref[...], 0.0)                       # ReLU
    h2 = jnp.dot(h1.astype(jnp.bfloat16), w2_ref[...],
                 preferred_element_type=jnp.float32)
    h2 = jnp.maximum(h2 + b2_ref[...], 0.0)                       # ReLU
    out = jnp.dot(h2.astype(jnp.bfloat16), w3_ref[...],
                  preferred_element_type=jnp.float32)
    o_ref[...] = (out + b3_ref[...]).astype(o_ref.dtype)          # Identity head


@functools.partial(jax.jit, static_argnames=("block_b",))
def critic_forward(obs_batch, params, *, block_b=512):
    """obs_batch: any shape that flattens to (B, obs_dim*num_agents).

    Returns (B, num_agents, 1) float32 value estimates.
    """
    w1, b1, w2, b2, w3, b3 = params
    in_dim = w1.shape[0]          # obs_dim * num_agents
    hidden = w1.shape[1]
    num_agents = w3.shape[1]

    x = obs_batch.reshape(-1, in_dim)
    B = x.shape[0]

    # ---- generation-friendly padding / tiling -------------------------------
    k_pad = _round_up(in_dim, 128)        # full-K first matmul, lane-aligned x
    n_pad = _round_up(num_agents, 128)    # lane-dense output stores (no vst.msk)
    tb = max(8, _round_up(min(block_b, _round_up(B, 8)), 8))   # 8-sublane aligned
    n_steps = pl.cdiv(B, tb)
    b_pad = n_steps * tb

    x_p = jnp.zeros((b_pad, k_pad), jnp.bfloat16).at[:B, :in_dim].set(
        x.astype(jnp.bfloat16))
    w1_p = jnp.zeros((k_pad, hidden), jnp.bfloat16).at[:in_dim, :].set(
        w1.astype(jnp.bfloat16))
    w2_b = w2.astype(jnp.bfloat16)
    w3_p = jnp.zeros((hidden, n_pad), jnp.bfloat16).at[:, :num_agents].set(
        w3.astype(jnp.bfloat16))
    b3_p = jnp.zeros((1, n_pad), jnp.float32).at[:, :num_agents].set(b3)

    full = lambda a: pl.BlockSpec(a.shape, lambda i: (0, 0))   # grid-invariant

    out_p = pl.pallas_call(
        _critic_kernel,
        out_shape=jax.ShapeDtypeStruct((b_pad, n_pad), jnp.float32),
        grid_spec=pltpu.PrefetchScalarGridSpec(
            num_scalar_prefetch=0,
            grid=(n_steps,),
            in_specs=[
                pl.BlockSpec((tb, k_pad), lambda i: (i, 0)),    # obs tile
                full(w1_p), full(b1),
                full(w2_b), full(b2),
                full(w3_p), full(b3_p),
            ],
            out_specs=pl.BlockSpec((tb, n_pad), lambda i: (i, 0)),
        ),
        compiler_params=pltpu.CompilerParams(
            dimension_semantics=("parallel",),   # megacore-shardable batch axis
        ),
    )(x_p, w1_p, b1, w2_b, b2, w3_p, b3_p)

    values = out_p[:B, :num_agents]              # drop batch / lane padding
    return values.reshape(-1, num_agents, 1)


def init_critic_params(key, obs_dim, num_agents):
    """nn.Linear-style init: U(-1/sqrt(fan_in), 1/sqrt(fan_in)).

    Weights stored (fan_in, fan_out); biases (1, fan_out).
    NOTE: the PyTorch code hard-codes obs_dim*3 for prev_dense while reshaping
    by obs_dim*num_agents; these agree only when num_agents == 3 (as here).
    """
    in_dim = obs_dim * num_agents
    sizes = [(in_dim, HIDDEN_SIZE), (HIDDEN_SIZE, HIDDEN_SIZE),
             (HIDDEN_SIZE, num_agents)]
    params = []
    for fan_in, fan_out in sizes:
        key, kw, kb = jax.random.split(key, 3)
        bound = 1.0 / jnp.sqrt(jnp.float32(fan_in))
        w = jax.random.uniform(kw, (fan_in, fan_out), jnp.float32, -bound, bound)
        b = jax.random.uniform(kb, (1, fan_out), jnp.float32, -bound, bound)
        params += [w, b]
    return tuple(params)


def _critic_reference_bf16(obs, params, num_agents):
    """Pure-JAX reference that mirrors the kernel's bf16-in / f32-accumulate math."""
    w1, b1, w2, b2, w3, b3 = params
    x = obs.reshape(-1, w1.shape[0]).astype(jnp.bfloat16)
    h1 = jnp.maximum(jnp.dot(x, w1.astype(jnp.bfloat16),
                             preferred_element_type=jnp.float32) + b1, 0.0)
    h2 = jnp.maximum(jnp.dot(h1.astype(jnp.bfloat16), w2.astype(jnp.bfloat16),
                             preferred_element_type=jnp.float32) + b2, 0.0)
    out = jnp.dot(h2.astype(jnp.bfloat16), w3.astype(jnp.bfloat16),
                  preferred_element_type=jnp.float32) + b3
    return out.reshape(-1, num_agents, 1)


def _critic_reference_f32(obs, params, num_agents):
    w1, b1, w2, b2, w3, b3 = params
    x = obs.reshape(-1, w1.shape[0])
    h1 = jnp.maximum(x @ w1 + b1, 0.0)
    h2 = jnp.maximum(h1 @ w2 + b2, 0.0)
    out = h2 @ w3 + b3
    return out.reshape(-1, num_agents, 1)


if __name__ == "__main__":
    # Small but representative shapes: 3 agents, per-agent obs of 26 features,
    # 48 stacked transitions.  block_b=32 exercises batch padding (48 -> 64)
    # and a 2-step grid.
    NUM_AGENTS, OBS_DIM, B = 3, 26, 48

    key = jax.random.PRNGKey(0)
    k_obs, k_params = jax.random.split(key)

    obs = jax.random.normal(k_obs, (B, NUM_AGENTS, OBS_DIM), dtype=jnp.float32)
    params = init_critic_params(k_params, OBS_DIM, NUM_AGENTS)

    out = critic_forward(obs, params, block_b=32)
    out = jax.block_until_ready(out)
    assert out.shape == (B, NUM_AGENTS, 1)

    # Exact-semantics reference (same bf16 quantization of matmul inputs).
    ref_bf16 = _critic_reference_bf16(obs, params, NUM_AGENTS)
    assert jnp.allclose(out, ref_bf16, atol=5e-3, rtol=5e-3), (
        float(jnp.max(jnp.abs(out - ref_bf16))))

    # Loose sanity check against full-f32 math (bf16 approximation error only).
    ref_f32 = _critic_reference_f32(obs, params, NUM_AGENTS)
    assert jnp.allclose(out, ref_f32, atol=1e-1, rtol=1e-1), (
        float(jnp.max(jnp.abs(out - ref_f32))))

    print("KERNEL_OK")
</pallas_src>

<mosaic_0001>
module attributes {stable_mosaic.version = 11 : i64} {
  func.func @_critic_kernel(%arg0: i32, %arg1: memref<32x128xbf16, #tpu.memory_space<vmem>>, %arg2: memref<128x256xbf16, #tpu.memory_space<vmem>>, %arg3: memref<1x256xf32, #tpu.memory_space<vmem>>, %arg4: memref<256x256xbf16, #tpu.memory_space<vmem>>, %arg5: memref<1x256xf32, #tpu.memory_space<vmem>>, %arg6: memref<256x128xbf16, #tpu.memory_space<vmem>>, %arg7: memref<1x128xf32, #tpu.memory_space<vmem>>, %arg8: memref<32x128xf32, #tpu.memory_space<vmem>>) attributes {dimension_semantics = [#tpu.dimension_semantics<parallel>], iteration_bounds = array<i64: 2>, scalar_prefetch = 0 : i64, scratch_operands = 0 : i64, tpu.core_type = #tpu.core_type<tc>, window_params = [{transform_indices = @transform_0, window_bounds = array<i64: 32, 128>}, {pipeline_mode = #tpu.pipeline_mode<synchronous>, transform_indices = @transform_1, window_bounds = array<i64: 128, 256>}, {pipeline_mode = #tpu.pipeline_mode<synchronous>, transform_indices = @transform_2, window_bounds = array<i64: 1, 256>}, {pipeline_mode = #tpu.pipeline_mode<synchronous>, transform_indices = @transform_3, window_bounds = array<i64: 256, 256>}, {pipeline_mode = #tpu.pipeline_mode<synchronous>, transform_indices = @transform_4, window_bounds = array<i64: 1, 256>}, {pipeline_mode = #tpu.pipeline_mode<synchronous>, transform_indices = @transform_5, window_bounds = array<i64: 256, 128>}, {pipeline_mode = #tpu.pipeline_mode<synchronous>, transform_indices = @transform_6, window_bounds = array<i64: 1, 128>}, {transform_indices = @transform_7, window_bounds = array<i64: 32, 128>}]} {
    %c0 = arith.constant 0 : index
    %c0_0 = arith.constant 0 : index
    %0 = vector.load %arg1[%c0, %c0_0] : memref<32x128xbf16, #tpu.memory_space<vmem>>, vector<32x128xbf16>
    %c0_1 = arith.constant 0 : index
    %c0_2 = arith.constant 0 : index
    %1 = vector.load %arg2[%c0_1, %c0_2] : memref<128x256xbf16, #tpu.memory_space<vmem>>, vector<128x256xbf16>
    %cst = arith.constant dense<0.000000e+00> : vector<32x256xf32>
    %2 = tpu.matmul %0, %1, %cst {dimension_numbers = #tpu.dot_dimension_numbers<[1], [0], [0], [1], [0, 0, 1, 1], [], []>} : vector<32x128xbf16>, vector<128x256xbf16>, vector<32x256xf32> -> vector<32x256xf32>
    %c0_3 = arith.constant 0 : index
    %c0_4 = arith.constant 0 : index
    %3 = vector.load %arg3[%c0_3, %c0_4] : memref<1x256xf32, #tpu.memory_space<vmem>>, vector<1x256xf32>
    %4 = vector.broadcast %3 : vector<1x256xf32> to vector<32x256xf32>
    %5 = arith.addf %2, %4 : vector<32x256xf32>
    %cst_5 = arith.constant 0.000000e+00 : f32
    %6 = vector.broadcast %cst_5 : f32 to vector<32x256xf32>
    %7 = arith.maximumf %5, %6 : vector<32x256xf32>
    %8 = arith.truncf %7 : vector<32x256xf32> to vector<32x256xbf16>
    %c0_6 = arith.constant 0 : index
    %c0_7 = arith.constant 0 : index
    %9 = vector.load %arg4[%c0_6, %c0_7] : memref<256x256xbf16, #tpu.memory_space<vmem>>, vector<256x256xbf16>
    %cst_8 = arith.constant dense<0.000000e+00> : vector<32x256xf32>
    %10 = tpu.matmul %8, %9, %cst_8 {dimension_numbers = #tpu.dot_dimension_numbers<[1], [0], [0], [1], [0, 0, 1, 1], [], []>} : vector<32x256xbf16>, vector<256x256xbf16>, vector<32x256xf32> -> vector<32x256xf32>
    %c0_9 = arith.constant 0 : index
    %c0_10 = arith.constant 0 : index
    %11 = vector.load %arg5[%c0_9, %c0_10] : memref<1x256xf32, #tpu.memory_space<vmem>>, vector<1x256xf32>
    %12 = vector.broadcast %11 : vector<1x256xf32> to vector<32x256xf32>
    %13 = arith.addf %10, %12 : vector<32x256xf32>
    %cst_11 = arith.constant 0.000000e+00 : f32
    %14 = vector.broadcast %cst_11 : f32 to vector<32x256xf32>
    %15 = arith.maximumf %13, %14 : vector<32x256xf32>
    %16 = arith.truncf %15 : vector<32x256xf32> to vector<32x256xbf16>
    %c0_12 = arith.constant 0 : index
    %c0_13 = arith.constant 0 : index
    %17 = vector.load %arg6[%c0_12, %c0_13] : memref<256x128xbf16, #tpu.memory_space<vmem>>, vector<256x128xbf16>
    %cst_14 = arith.constant dense<0.000000e+00> : vector<32x128xf32>
    %18 = tpu.matmul %16, %17, %cst_14 {dimension_numbers = #tpu.dot_dimension_numbers<[1], [0], [0], [1], [0, 0, 1, 1], [], []>} : vector<32x256xbf16>, vector<256x128xbf16>, vector<32x128xf32> -> vector<32x128xf32>
    %c0_15 = arith.constant 0 : index
    %c0_16 = arith.constant 0 : index
    %19 = vector.load %arg7[%c0_15, %c0_16] : memref<1x128xf32, #tpu.memory_space<vmem>>, vector<1x128xf32>
    %20 = vector.broadcast %19 : vector<1x128xf32> to vector<32x128xf32>
    %21 = arith.addf %18, %20 : vector<32x128xf32>
    %c0_17 = arith.constant 0 : index
    %c0_18 = arith.constant 0 : index
    %22 = vector.load %arg8[%c0_17, %c0_18] : memref<32x128xf32, #tpu.memory_space<vmem>>, vector<32x128xf32>
    tpu.vector_store %arg8[%c0_17, %c0_18], %21 {strides = array<i32>} : memref<32x128xf32, #tpu.memory_space<vmem>>, vector<32x128xf32>,
    return
  }
  func.func @transform_0(%arg0: i32) -> (i32, i32) {
    %c0_i32 = arith.constant 0 : i32
    %c0_i32_0 = arith.constant 0 : i32
    return %arg0, %c0_i32 : i32, i32
  }
  func.func @transform_1(%arg0: i32) -> (i32, i32) {
    %c0_i32 = arith.constant 0 : i32
    %c0_i32_0 = arith.constant 0 : i32
    %c0_i32_1 = arith.constant 0 : i32
    return %c0_i32, %c0_i32_0 : i32, i32
  }
  func.func @transform_2(%arg0: i32) -> (i32, i32) {
    %c0_i32 = arith.constant 0 : i32
    %c0_i32_0 = arith.constant 0 : i32
    %c0_i32_1 = arith.constant 0 : i32
    return %c0_i32, %c0_i32_0 : i32, i32
  }
  func.func @transform_3(%arg0: i32) -> (i32, i32) {
    %c0_i32 = arith.constant 0 : i32
    %c0_i32_0 = arith.constant 0 : i32
    %c0_i32_1 = arith.constant 0 : i32
    return %c0_i32, %c0_i32_0 : i32, i32
  }
  func.func @transform_4(%arg0: i32) -> (i32, i32) {
    %c0_i32 = arith.constant 0 : i32
    %c0_i32_0 = arith.constant 0 : i32
    %c0_i32_1 = arith.constant 0 : i32
    return %c0_i32, %c0_i32_0 : i32, i32
  }
  func.func @transform_5(%arg0: i32) -> (i32, i32) {
    %c0_i32 = arith.constant 0 : i32
    %c0_i32_0 = arith.constant 0 : i32
    %c0_i32_1 = arith.constant 0 : i32
    return %c0_i32, %c0_i32_0 : i32, i32
  }
  func.func @transform_6(%arg0: i32) -> (i32, i32) {
    %c0_i32 = arith.constant 0 : i32
    %c0_i32_0 = arith.constant 0 : i32
    %c0_i32_1 = arith.constant 0 : i32
    return %c0_i32, %c0_i32_0 : i32, i32
  }
  func.func @transform_7(%arg0: i32) -> (i32, i32) {
    %c0_i32 = arith.constant 0 : i32
    %c0_i32_0 = arith.constant 0 : i32
    return %arg0, %c0_i32 : i32, i32
  }
}

</mosaic_0001>

<bundles_post_ra>
// kernel: critic_forward.1
= control target key start
LH: loop header
LB: loop body
LE: loop exit
PB: predicated region body
PF: predicated region fallthrough
CT: control target
= control target key end

     0   :  { %s1364_s24 = smov 0   ;;  %s1736_s0 = inlined_call_operand.vmem [shape: bf16[64,128], index: 0, kind: input, shape index: {}]   ;;  %s1737_s1 = inlined_call_operand.vmem [shape: bf16[128,256], index: 1, kind: input, shape index: {}]   ;;  %s1738_s2 = inlined_call_operand.vmem [shape: f32[1,256], index: 2, kind: input, shape index: {}]   ;;  %s1739_s3 = inlined_call_operand.vmem [shape: bf16[256,256], index: 3, kind: input, shape index: {}]   ;;  %s1740_s4 = inlined_call_operand.vmem [shape: f32[1,256], index: 4, kind: input, shape index: {}]   ;;  %s1741_s5 = inlined_call_operand.vmem [shape: bf16[256,128], index: 5, kind: input, shape index: {}]   ;;  %s1742_s6 = inlined_call_operand.vmem [shape: f32[1,128], index: 6, kind: input, shape index: {}]   ;;  %s1743_s7 = inlined_call_operand.vmem [shape: f32[64,128], index: 7, kind: output, shape index: {}]  }
   0x1 LB: > { %s966_s25 = sadd.s32 4294967295, %s1322_s24   ;;  %p970_p0 = scmp.ge.s32.totalorder %s1322_s24, 1  ;;  %s1322_s24 = sphi %s1364_s24, %s17_s24  }
   0x2   : > { %p238_p1 = scmp.lt.s32.totalorder %s1322_s24, 3 }
   0x4   : > { %p239_p2 = pnand %p970_p0, %p238_p1 }
   0x5   : > { %s971_s14 = sshll.u32 (!%p239_p2), %s966_s25, 2 }
   0x6   : > { %242 = sbr.rel (%p239_p2) target bundleno = 494 (0x1ee), region = 48  ;;  %p271_p3 = scmp.lt.s32.totalorder (!%p239_p2), %s971_s14, 7 }
   0xb   : > { %v1041_v0 = vld [vmem:[%s1737_s1 + $0x70] sm:$0xf]  ;;  %v1258_v1 = vld [vmem:[%s1737_s1 + $0x74] sm:$0xf0]  ;;  %v1257_v2 = vld [vmem:[%s1737_s1 + $0x74] sm:$0xf] }
   0xc   : > { %v1042_v3 = vor.u32 %v1258_v1, %v1041_v0  ;;  %v1043_v4 = vld [vmem:[%s1737_s1 + $0x78] sm:$0xf0]  ;;  %v1033_v5 = vld [vmem:[%s1737_s1 + $0x60] sm:$0xf]  ;;  %v1256_v6 = vld [vmem:[%s1737_s1 + $0x64] sm:$0xf0] }
   0xd   : > { %v1046_v7 = vor.u32 %v1257_v2, %v1043_v4  ;;  %v1255_v8 = vld [vmem:[%s1737_s1 + $0x64] sm:$0xf]  ;;  %v1035_v9 = vld [vmem:[%s1737_s1 + $0x68] sm:$0xf0]  ;;  %v1034_v10 = vor.u32 %v1256_v6, %v1033_v5  ;;  %v1025_v12 = vld [vmem:[%s1737_s1 + $0x50] sm:$0xf] }
   0xe   : > { %400 = vmatpush.bf16.msra.mxu0 %v1042_v3  ;;  %v1038_v11 = vor.u32 %v1255_v8, %v1035_v9  ;;  %v1254_v13 = vld [vmem:[%s1737_s1 + $0x54] sm:$0xf0]  ;;  %v1253_v14 = vld [vmem:[%s1737_s1 + $0x54] sm:$0xf]  ;;  %v1027_v15 = vld [vmem:[%s1737_s1 + $0x58] sm:$0xf0] }
   0xf   : > { %419 = vmatpush.bf16.msra.mxu1 %v1046_v7  ;;  %v1026_v16 = vor.u32 %v1254_v13, %v1025_v12  ;;  %v1030_v17 = vor.u32 %v1253_v14, %v1027_v15  ;;  %v1017_v18 = vld [vmem:[%s1737_s1 + $0x40] sm:$0xf]  ;;  %v1252_v19 = vld [vmem:[%s1737_s1 + $0x44] sm:$0xf0]  ;;  %v1251_v20 = vld [vmem:[%s1737_s1 + $0x44] sm:$0xf] }
  0x10   : > { %v1019_v21 = vld [vmem:[%s1737_s1 + $0x48] sm:$0xf0]  ;;  %v1018_v22 = vor.u32 %v1252_v19, %v1017_v18  ;;  %v1009_v24 = vld [vmem:[%s1737_s1 + $0x30] sm:$0xf]  ;;  %v1250_v25 = vld [vmem:[%s1737_s1 + $0x34] sm:$0xf0] }
  0x11   : > { %v1022_v23 = vor.u32 %v1251_v20, %v1019_v21  ;;  %v1249_v26 = vld [vmem:[%s1737_s1 + $0x34] sm:$0xf]  ;;  %v1011_v27 = vld [vmem:[%s1737_s1 + $0x38] sm:$0xf0]  ;;  %v1010_v28 = vor.u32 %v1250_v25, %v1009_v24  ;;  %v1001_v30 = vld [vmem:[%s1737_s1 + $0x20] sm:$0xf] }
  0x12   : > { %401 = vmatpush.bf16.msra.mxu0 %v1034_v10  ;;  %v1014_v29 = vor.u32 %v1249_v26, %v1011_v27  ;;  %v1248_v31 = vld [vmem:[%s1737_s1 + $0x24] sm:$0xf0]  ;;  %v1247_v32 = vld [vmem:[%s1737_s1 + $0x24] sm:$0xf]  ;;  %v1003_v33 = vld [vmem:[%s1737_s1 + $0x28] sm:$0xf0] }
  0x13   : > { %420 = vmatpush.bf16.msra.mxu1 %v1038_v11  ;;  %s1745_s14 = smov (!%p271_p3, %s971_s14), 7  ;;  %v1002_v34 = vor.u32 %v1248_v31, %v1001_v30  ;;  %v1105_v35 = vld [vmem:[%s1739_s3 + $0x70] sm:$0xf]  ;;  %v1274_v36 = vld [vmem:[%s1739_s3 + $0x74] sm:$0xf0]  ;;  %v1006_v38 = vor.u32 %v1247_v32, %v1003_v33 }
  0x14   : > { %v1169_v37 = vld [vmem:[%s1739_s3 + $0xf0] sm:$0xf]  ;;  %v1246_v40 = vld [vmem:[%s1737_s1 + $0x14] sm:$0xf0]  ;;  %v1106_v41 = vor.u32 %v1274_v36, %v1105_v35  ;;  %v1245_v43 = vld [vmem:[%s1737_s1 + $0x14] sm:$0xf] }
  0x15   : > { %v993_v39 = vld [vmem:[%s1737_s1 + $0x10] sm:$0xf]  ;;  %v1290_v42 = vld [vmem:[%s1739_s3 + $0xf4] sm:$0xf0]  ;;  %v995_v44 = vld [vmem:[%s1737_s1 + $0x18] sm:$0xf0] }
  0x16   : > { %402 = vmatpush.bf16.msra.mxu0 %v1026_v16  ;;  %v1170_v45 = vor.u32 %v1290_v42, %v1169_v37  ;;  %v1097_v46 = vld [vmem:[%s1739_s3 + $0x60] sm:$0xf]  ;;  %v1244_v48 = vld [vmem:[%s1737_s1 + $0x4] sm:$0xf0]  ;;  %648 = vmatpush.bf16.msra.mxu2 %v1106_v41  ;;  %v994_v52 = vor.u32 %v1246_v40, %v993_v39  ;;  %v1243_v53 = vld [vmem:[%s1737_s1 + $0x4] sm:$0xf]  ;;  %v998_v57 = vor.u32 %v1245_v43, %v995_v44 }
  0x17   : > { %421 = vmatpush.bf16.msra.mxu1 %v1030_v17  ;;  %v985_v47 = vld [vmem:[%s1737_s1] sm:$0xf]  ;;  %v1272_v49 = vld [vmem:[%s1739_s3 + $0x64] sm:$0xf0]  ;;  %v987_v54 = vld [vmem:[%s1737_s1 + $0x8] sm:$0xf0] }
  0x18   : > { %v1161_v50 = vld [vmem:[%s1739_s3 + $0xe0] sm:$0xf]  ;;  %v1288_v51 = vld [vmem:[%s1739_s3 + $0xe4] sm:$0xf0]  ;;  %s972_s21 = sshll.u32 %s1745_s14, 2  ;;  %667 = vmatpush.bf16.msra.mxu3 %v1170_v45  ;;  %v1098_v55 = vor.u32 %v1272_v49, %v1097_v46  ;;  %v986_v3 = vor.u32 %v1244_v48, %v985_v47  ;;  %v990_v7 = vor.u32 %v1243_v53, %v987_v54  ;;  %s974_s30 = sshll.u32 %s1745_s14, 3 }
  0x19   : > { %v1162_v56 = vor.u32 %v1288_v51, %v1161_v50  ;;  %v1273_v58 = vld [vmem:[%s1739_s3 + $0x74] sm:$0xf]  ;;  %v1089_v59 = vld [vmem:[%s1739_s3 + $0x50] sm:$0xf]  ;;  %v1270_v60 = vld [vmem:[%s1739_s3 + $0x54] sm:$0xf0]  ;;  %s1524_s19 = scalar_lea.vmem %s1736_s0, %s972_s21  ;;  %s280_s10 = scalar_lea.vmem %s1743_s7, %s974_s30 }
  0x1a   : > { %403 = vmatpush.bf16.msra.mxu0 %v1018_v22  ;;  %v1107_v61 = vld [vmem:[%s1739_s3 + $0x78] sm:$0xf0]  ;;  %v1153_v62 = vld [vmem:[%s1739_s3 + $0xd0] sm:$0xf]  ;;  %v1286_v63 = vld [vmem:[%s1739_s3 + $0xd4] sm:$0xf0]  ;;  %649 = vmatpush.bf16.msra.mxu2 %v1098_v55  ;;  %v1090_v2 = vor.u32 %v1270_v60, %v1089_v59 }
  0x1b   : > { %422 = vmatpush.bf16.msra.mxu1 %v1022_v23  ;;  %v1289_v0 = vld [vmem:[%s1739_s3 + $0xf4] sm:$0xf]  ;;  %v1171_v1 = vld [vmem:[%s1739_s3 + $0xf8] sm:$0xf0]  ;;  %v1154_v4 = vor.u32 %v1286_v63, %v1153_v62  ;;  %v1081_v5 = vld [vmem:[%s1739_s3 + $0x40] sm:$0xf]  ;;  %v1110_v8 = vor.u32 %v1273_v58, %v1107_v61 }
  0x1c   : > { %668 = vmatpush.bf16.msra.mxu3 %v1162_v56  ;;  %v1268_v6 = vld [vmem:[%s1739_s3 + $0x44] sm:$0xf0]  ;;  %v1145_v9 = vld [vmem:[%s1739_s3 + $0xc0] sm:$0xf]  ;;  %v1174_v11 = vor.u32 %v1289_v0, %v1171_v1  ;;  %v1271_v12 = vld [vmem:[%s1739_s3 + $0x64] sm:$0xf] }
  0x1d   : > { %v1284_v10 = vld [vmem:[%s1739_s3 + $0xc4] sm:$0xf0]  ;;  %v1099_v13 = vld [vmem:[%s1739_s3 + $0x68] sm:$0xf0]  ;;  %v1241_v14 = vld [vmem:[%s1524_s19] sm:$0xff]  ;;  %v1082_v17 = vor.u32 %v1268_v6, %v1081_v5 }
  0x1e   : > { %404 = vmatpush.bf16.msra.mxu0 %v1010_v28  ;;  %v1287_v15 = vld [vmem:[%s1739_s3 + $0xe4] sm:$0xf]  ;;  %v1163_v16 = vld [vmem:[%s1739_s3 + $0xe8] sm:$0xf0]  ;;  %650 = vmatpush.bf16.msra.mxu2 %v1090_v2  ;;  %v1146_v18 = vor.u32 %v1284_v10, %v1145_v9  ;;  %v1102_v19 = vor.u32 %v1271_v12, %v1099_v13  ;;  %v1269_v21 = vld [vmem:[%s1739_s3 + $0x54] sm:$0xf] }
  0x1f   : > { %423 = vmatpush.bf16.msra.mxu1 %v1014_v29  ;;  %v1166_v20 = vor.u32 %v1287_v15, %v1163_v16  ;;  %v1091_v22 = vld [vmem:[%s1739_s3 + $0x58] sm:$0xf0]  ;;  %v1285_v23 = vld [vmem:[%s1739_s3 + $0xd4] sm:$0xf]  ;;  %v1267_v27 = vld [vmem:[%s1739_s3 + $0x44] sm:$0xf] }
  0x20   : > { %669 = vmatpush.bf16.msra.mxu3 %v1154_v4  ;;  %v1155_v24 = vld [vmem:[%s1739_s3 + $0xd8] sm:$0xf0]  ;;  %v1094_v25 = vor.u32 %v1269_v21, %v1091_v22  ;;  %v1083_v28 = vld [vmem:[%s1739_s3 + $0x48] sm:$0xf0]  ;;  %v1283_v29 = vld [vmem:[%s1739_s3 + $0xc4] sm:$0xf] }
  0x21   : > { %v1158_v26 = vor.u32 %v1285_v23, %v1155_v24  ;;  %v1147_v30 = vld [vmem:[%s1739_s3 + $0xc8] sm:$0xf0]  ;;  %v1086_v31 = vor.u32 %v1267_v27, %v1083_v28  ;;  %v1266_v35 = vld [vmem:[%s1739_s3 + $0x34] sm:$0xf0]  ;;  %v1137_v36 = vld [vmem:[%s1739_s3 + $0xb0] sm:$0xf] }
  0x22   : > { %405 = vmatpush.bf16.msra.mxu0 %v1002_v34  ;;  %651 = vmatpush.bf16.msra.mxu2 %v1082_v17  ;;  %v1150_v32 = vor.u32 %v1283_v29, %v1147_v30  ;;  %v1242_v33 = vld [vmem:[%s1524_s19 + $0x8] sm:$0xff]  ;;  %v1073_v34 = vld [vmem:[%s1739_s3 + $0x30] sm:$0xf]  ;;  %v1265_v39 = vld [vmem:[%s1739_s3 + $0x34] sm:$0xf] }
  0x23   : > { %424 = vmatpush.bf16.msra.mxu1 %v1006_v38  ;;  %v1074_v37 = vor.u32 %v1266_v35, %v1073_v34  ;;  %v1282_v38 = vld [vmem:[%s1739_s3 + $0xb4] sm:$0xf0]  ;;  %v1075_v40 = vld [vmem:[%s1739_s3 + $0x38] sm:$0xf0]  ;;  %v1281_v43 = vld [vmem:[%s1739_s3 + $0xb4] sm:$0xf] }
  0x24   : > { %670 = vmatpush.bf16.msra.mxu3 %v1146_v18  ;;  %v1138_v41 = vor.u32 %v1282_v38, %v1137_v36  ;;  %v1078_v42 = vor.u32 %v1265_v39, %v1075_v40  ;;  %v1139_v44 = vld [vmem:[%s1739_s3 + $0xb8] sm:$0xf0]  ;;  %v1065_v46 = vld [vmem:[%s1739_s3 + $0x20] sm:$0xf]  ;;  %v1264_v47 = vld [vmem:[%s1739_s3 + $0x24] sm:$0xf0] }
  0x25   : > { %v1142_v45 = vor.u32 %v1281_v43, %v1139_v44  ;;  %v1066_v48 = vor.u32 %v1264_v47, %v1065_v46  ;;  %v1129_v49 = vld [vmem:[%s1739_s3 + $0xa0] sm:$0xf]  ;;  %v1280_v50 = vld [vmem:[%s1739_s3 + $0xa4] sm:$0xf0]  ;;  %v1263_v51 = vld [vmem:[%s1739_s3 + $0x24] sm:$0xf] }
  0x26   : > { %406 = vmatpush.bf16.msra.mxu0 %v994_v52  ;;  %652 = vmatpush.bf16.msra.mxu2 %v1074_v37  ;;  %v1130_v52 = vor.u32 %v1280_v50, %v1129_v49  ;;  %v1067_v53 = vld [vmem:[%s1739_s3 + $0x28] sm:$0xf0]  ;;  %v1279_v54 = vld [vmem:[%s1739_s3 + $0xa4] sm:$0xf]  ;;  %v1057_v58 = vld [vmem:[%s1739_s3 + $0x10] sm:$0xf] }
  0x27   : > { %425 = vmatpush.bf16.msra.mxu1 %v998_v57  ;;  %v1131_v55 = vld [vmem:[%s1739_s3 + $0xa8] sm:$0xf0]  ;;  %v1070_v56 = vor.u32 %v1263_v51, %v1067_v53  ;;  %v1262_v59 = vld [vmem:[%s1739_s3 + $0x14] sm:$0xf0]  ;;  %v1121_v60 = vld [vmem:[%s1739_s3 + $0x90] sm:$0xf] }
  0x28   : > { %671 = vmatpush.bf16.msra.mxu3 %v1138_v41  ;;  %v1134_v57 = vor.u32 %v1279_v54, %v1131_v55  ;;  %v1058_v61 = vor.u32 %v1262_v59, %v1057_v58  ;;  %v1278_v62 = vld [vmem:[%s1739_s3 + $0x94] sm:$0xf0]  ;;  %v1261_v63 = vld [vmem:[%s1739_s3 + $0x14] sm:$0xf]  ;;  %v1059_v0 = vld [vmem:[%s1739_s3 + $0x18] sm:$0xf0] }
  0x29   : > { %v1122_v1 = vor.u32 %v1278_v62, %v1121_v60  ;;  %v1062_v2 = vor.u32 %v1261_v63, %v1059_v0  ;;  %v1123_v4 = vld [vmem:[%s1739_s3 + $0x98] sm:$0xf0]  ;;  %v1049_v6 = vld [vmem:[%s1739_s3] sm:$0xf]  ;;  %v1276_v10 = vld [vmem:[%s1739_s3 + $0x84] sm:$0xf0] }
  0x2a   : > { %407 = vmatpush.bf16.msra.mxu0 %v986_v3  ;;  %653 = vmatpush.bf16.msra.mxu2 %v1066_v48  ;;  %v1277_v3 = vld [vmem:[%s1739_s3 + $0x94] sm:$0xf]  ;;  %v1051_v12 = vld [vmem:[%s1739_s3 + $0x8] sm:$0xf0]  ;;  %v1275_v15 = vld [vmem:[%s1739_s3 + $0x84] sm:$0xf] }
  0x2b   : > { %426 = vmatpush.bf16.msra.mxu1 %v990_v7  ;;  %v1126_v5 = vor.u32 %v1277_v3, %v1123_v4  ;;  %v1260_v7 = vld [vmem:[%s1739_s3 + $0x4] sm:$0xf0]  ;;  %v1115_v16 = vld [vmem:[%s1739_s3 + $0x88] sm:$0xf0]  ;;  %v302_v18 = vld [vmem:[%s1738_s2] sm:$0x3] }
  0x2c   : > { %672 = vmatpush.bf16.msra.mxu3 %v1130_v52  ;;  %v1050_v9 = vor.u32 %v1260_v7, %v1049_v6  ;;  %v1118_v17 = vor.u32 %v1275_v15, %v1115_v16  ;;  %v1298_v21 = vld [vmem:[%s1741_s5 + $0x38] sm:$0xff]  ;;  %v1305_v23 = vld [vmem:[%s1741_s5 + $0x70] sm:$0xff]  ;;  %v1304_v27 = vld [vmem:[%s1741_s5 + $0x68] sm:$0xff] }
  0x2d   : > { %408 = vmatmul.bf16.vlgmr.msra.gmra.mxu0 %v1241_v14  ;;  %v1297_v24 = vld [vmem:[%s1741_s5 + $0x30] sm:$0xff]  ;;  %v1296_v28 = vld [vmem:[%s1741_s5 + $0x28] sm:$0xff]  ;;  %v1303_v35 = vld [vmem:[%s1741_s5 + $0x60] sm:$0xff] }
  0x2e   : > { %686 = vmatpush.bf16.msrb.mxu0 %v1110_v8  ;;  %427 = vmatmul.bf16.vlgmr.msra.gmra.mxu1 %v1241_v14  ;;  %v1113_v8 = vld [vmem:[%s1739_s3 + $0x80] sm:$0xf]  ;;  %v1301_v58 = vld [vmem:[%s1741_s5 + $0x50] sm:$0xff]  ;;  %v1294_v59 = vld [vmem:[%s1741_s5 + $0x18] sm:$0xff] }
  0x2f   : > { %705 = vmatpush.bf16.msrb.mxu1 %v1174_v11  ;;  %654 = vmatpush.bf16.msra.mxu2 %v1058_v61  ;;  %v1259_v11 = vld [vmem:[%s1739_s3 + $0x4] sm:$0xf]  ;;  %v1114_v13 = vor.u32 %v1276_v10, %v1113_v8  ;;  %v1300_v60 = vld [vmem:[%s1741_s5 + $0x48] sm:$0xff]  ;;  %v1293_v61 = vld [vmem:[%s1741_s5 + $0x10] sm:$0xff] }
  0x30   : > { %673 = vmatpush.bf16.msra.mxu3 %v1122_v1  ;;  %v1054_v14 = vor.u32 %v1259_v11, %v1051_v12  ;;  %v1299_v62 = vld [vmem:[%s1741_s5 + $0x40] sm:$0xff]  ;;  %v1292_v63 = vld [vmem:[%s1741_s5 + $0x8] sm:$0xff] }
  0x31   : > { %v1291_v0 = vld [vmem:[%s1741_s5] sm:$0xff] }
  0x32   : > { %687 = vmatpush.bf16.msrb.mxu0 %v1102_v19  ;;  %v482_v1 = vld [vmem:[%s1740_s4] sm:$0x3] }
  0x33   : > { %706 = vmatpush.bf16.msrb.mxu1 %v1166_v20  ;;  %655 = vmatpush.bf16.msra.mxu2 %v1050_v9  ;;  %v1306_v20 = vld [vmem:[%s1741_s5 + $0x78] sm:$0xff]  ;;  %v485_v3 = vperm.slane %v482_v1, 1  ;;  %v484_v7 = vperm.slane %v482_v1, 0 }
  0x34   : > { %674 = vmatpush.bf16.msra.mxu3 %v1114_v13 }
  0x36   : > { %688 = vmatpush.bf16.msrb.mxu0 %v1094_v25  ;;  %v304_v25 = vperm.slane %v302_v18, 0 }
  0x37   : > { %707 = vmatpush.bf16.msrb.mxu1 %v1158_v26  ;;  %868 = vmatpush.bf16.msrb.mxu2 %v1298_v21  ;;  %v305_v26 = vperm.slane %v302_v18, 1 }
  0x38   : > { %887 = vmatpush.bf16.msrb.mxu3 %v1306_v20 }
  0x3a   : > { %689 = vmatpush.bf16.msrb.mxu0 %v1086_v31 }
  0x3b   : > { %708 = vmatpush.bf16.msrb.mxu1 %v1150_v32  ;;  %869 = vmatpush.bf16.msrb.mxu2 %v1297_v24 }
  0x3c   : > { %888 = vmatpush.bf16.msrb.mxu3 %v1305_v23 }
  0x3d   : > { %413 = vmatmul.bf16.gmra.mxu0 %v1242_v33 }
  0x3e   : > { %432 = vmatmul.bf16.gmra.mxu1 %v1242_v33  ;;  %690 = vmatpush.bf16.msrb.mxu0 %v1078_v42 }
  0x3f   : > { %709 = vmatpush.bf16.msrb.mxu1 %v1142_v45  ;;  %870 = vmatpush.bf16.msrb.mxu2 %v1296_v28 }
  0x40   : > { %889 = vmatpush.bf16.msrb.mxu3 %v1304_v27 }
  0x42   : > { %691 = vmatpush.bf16.msrb.mxu0 %v1070_v56  ;;  %v1302_v56 = vld [vmem:[%s1741_s5 + $0x58] sm:$0xff] }
  0x43   : > { %710 = vmatpush.bf16.msrb.mxu1 %v1134_v57  ;;  %v1295_v57 = vld [vmem:[%s1741_s5 + $0x20] sm:$0xff] }
  0x44   : > { %890 = vmatpush.bf16.msrb.mxu3 %v1303_v35  ;;  %871 = vmatpush.bf16.msrb.mxu2 %v1295_v57 }
  0x46   : > { %692 = vmatpush.bf16.msrb.mxu0 %v1062_v2 }
  0x47   : > { %711 = vmatpush.bf16.msrb.mxu1 %v1126_v5 }
  0x48   : > { %891 = vmatpush.bf16.msrb.mxu3 %v1302_v56  ;;  %872 = vmatpush.bf16.msrb.mxu2 %v1294_v59 }
  0x4a   : > { %693 = vmatpush.bf16.msrb.mxu0 %v1054_v14 }
  0x4b   : > { %712 = vmatpush.bf16.msrb.mxu1 %v1118_v17 }
  0x4c   : > { %892 = vmatpush.bf16.msrb.mxu3 %v1301_v58  ;;  %873 = vmatpush.bf16.msrb.mxu2 %v1293_v61 }
  0x50   : > { %893 = vmatpush.bf16.msrb.mxu3 %v1300_v60  ;;  %874 = vmatpush.bf16.msrb.mxu2 %v1292_v63 }
  0x54   : > { %894 = vmatpush.bf16.msrb.mxu3 %v1299_v62  ;;  %875 = vmatpush.bf16.msrb.mxu2 %v1291_v0 }
  0xaa   : > { %v409_v19 = vpop.f32.mrf.mxu0 }
  0xab   : > { %v428_v22 = vpop.f32.mrf.mxu1  ;;  %v410_v29 = vadd.f32 %v409_v19, %v304_v25 }
  0xac   : > { %v429_v30 = vadd.f32 %v428_v22, %v305_v26 }
  0xad   : > { %v438_v36 = vmax.f32 %v410_v29, 0.0 }
  0xae   : > { %v439_v38 = vmax.f32 %v429_v30, 0.0 }
  0xb2   : > { %v411_v31 = vpop.f32.mrf.mxu0 }
  0xb3   : > { %v412_v32 = vadd.f32 %v411_v31, %v304_v25  ;;  %v430_v33 = vpop.f32.mrf.mxu1 }
  0xb4   : > { %v431_v34 = vadd.f32 %v430_v33, %v305_v26 }
  0xb5   : > { %v440_v37 = vmax.f32 %v412_v32, 0.0 }
  0xb6   : > { %v441_v39 = vmax.f32 %v431_v34, 0.0 }
  0xb7   : > { %v446_v40 = vpack.c.bf16 %v440_v37, %v438_v36 }
  0xb8   : > { %v447_v41 = vpack.c.bf16 %v441_v39, %v439_v38 }
  0xb9   : > { %656 = vmatmul.bf16.vlgmr.msra.gmra.mxu2 %v446_v40  ;;  %694 = vmatmul.bf16.vlgmr.msrb.gmra.mxu0 %v446_v40 }
  0xba   : > { %675 = vmatmul.bf16.vlgmr.msra.gmra.mxu3 %v447_v41  ;;  %713 = vmatmul.bf16.vlgmr.msrb.gmra.mxu1 %v447_v41  ;;  %v414_v42 = vpop.f32.mrf.mxu0 }
  0xbb   : > { %v433_v43 = vpop.f32.mrf.mxu1  ;;  %v415_v44 = vadd.f32 %v414_v42, %v304_v25 }
  0xbc   : > { %v434_v45 = vadd.f32 %v433_v43, %v305_v26 }
  0xbd   : > { %v442_v50 = vmax.f32 %v415_v44, 0.0 }
  0xbe   : > { %v443_v52 = vmax.f32 %v434_v45, 0.0 }
  0xc2   : > { %v416_v46 = vpop.f32.mrf.mxu0 }
  0xc3   : > { %v417_v47 = vadd.f32 %v416_v46, %v304_v25  ;;  %v435_v48 = vpop.f32.mrf.mxu1 }
  0xc4   : > { %v436_v49 = vadd.f32 %v435_v48, %v305_v26 }
  0xc5   : > { %v444_v51 = vmax.f32 %v417_v47, 0.0 }
  0xc6   : > { %v445_v53 = vmax.f32 %v436_v49, 0.0  ;;  %v1315_v49 = vld [vmem:[%s1742_s6] ss:$0 sm:$0xff] }
  0xc7   : > { %v448_v54 = vpack.c.bf16 %v444_v51, %v442_v50 }
  0xc8   : > { %v449_v55 = vpack.c.bf16 %v445_v53, %v443_v52 }
  0xc9   : > { %661 = vmatmul.bf16.gmra.mxu2 %v448_v54  ;;  %699 = vmatmul.bf16.gmra.mxu0 %v448_v54 }
  0xca   : > { %680 = vmatmul.bf16.gmra.mxu3 %v449_v55  ;;  %718 = vmatmul.bf16.gmra.mxu1 %v449_v55 }
 0x136   : > { %v695_v2 = vpop.f32.mrf.mxu0 }
 0x137   : > { %v714_v4 = vpop.f32.mrf.mxu1  ;;  %v696_v5 = vadd.f32 %v695_v2, %v485_v3 }
 0x139   : > { %v715_v10 = vadd.f32 %v714_v4, %v696_v5 }
 0x13b   : > { %v725_v15 = vmax.f32 %v715_v10, 0.0 }
 0x13c   : > { %v657_v6 = vpop.f32.mrf.mxu2 }
 0x13d   : > { %v676_v8 = vpop.f32.mrf.mxu3  ;;  %v658_v13 = vadd.f32 %v657_v6, %v484_v7 }
 0x13e   : > { %v697_v9 = vpop.f32.mrf.mxu0 }
 0x13f   : > { %v698_v11 = vadd.f32 %v697_v9, %v485_v3  ;;  %v716_v12 = vpop.f32.mrf.mxu1  ;;  %v677_v18 = vadd.f32 %v676_v8, %v658_v13 }
 0x141   : > { %v717_v14 = vadd.f32 %v716_v12, %v698_v11  ;;  %v724_v25 = vmax.f32 %v677_v18, 0.0 }
 0x143   : > { %v727_v16 = vmax.f32 %v717_v14, 0.0 }
 0x144   : > { %v659_v17 = vpop.f32.mrf.mxu2 }
 0x145   : > { %v733_v19 = vpack.c.bf16 %v727_v16, %v725_v15  ;;  %v660_v20 = vadd.f32 %v659_v17, %v484_v7  ;;  %v678_v21 = vpop.f32.mrf.mxu3 }
 0x146   : > { %v700_v22 = vpop.f32.mrf.mxu0 }
 0x147   : > { %v679_v23 = vadd.f32 %v678_v21, %v660_v20  ;;  %v719_v24 = vpop.f32.mrf.mxu1  ;;  %895 = vmatmul.bf16.vlgmr.msrb.gmra.mxu3 %v733_v19  ;;  %v701_v28 = vadd.f32 %v700_v22, %v485_v3 }
 0x149   : > { %v726_v26 = vmax.f32 %v679_v23, 0.0  ;;  %v720_v32 = vadd.f32 %v719_v24, %v701_v28 }
 0x14b   : > { %v732_v27 = vpack.c.bf16 %v726_v26, %v724_v25  ;;  %v729_v37 = vmax.f32 %v720_v32, 0.0 }
 0x14c   : > { %v662_v29 = vpop.f32.mrf.mxu2 }
 0x14d   : > { %v681_v30 = vpop.f32.mrf.mxu3  ;;  %876 = vmatmul.bf16.vlgmr.msrb.gmra.mxu2 %v732_v27  ;;  %v663_v35 = vadd.f32 %v662_v29, %v484_v7 }
 0x14e   : > { %v702_v31 = vpop.f32.mrf.mxu0 }
 0x14f   : > { %v703_v33 = vadd.f32 %v702_v31, %v485_v3  ;;  %v721_v34 = vpop.f32.mrf.mxu1  ;;  %v682_v40 = vadd.f32 %v681_v30, %v663_v35 }
 0x151   : > { %v722_v36 = vadd.f32 %v721_v34, %v703_v33  ;;  %v728_v45 = vmax.f32 %v682_v40, 0.0 }
 0x153   : > { %v731_v38 = vmax.f32 %v722_v36, 0.0 }
 0x154   : > { %v664_v39 = vpop.f32.mrf.mxu2 }
 0x155   : > { %v665_v41 = vadd.f32 %v664_v39, %v484_v7  ;;  %v735_v42 = vpack.c.bf16 %v731_v38, %v729_v37  ;;  %v683_v43 = vpop.f32.mrf.mxu3 }
 0x157   : > { %v684_v44 = vadd.f32 %v683_v43, %v665_v41  ;;  %900 = vmatmul.bf16.gmra.mxu3 %v735_v42 }
 0x159   : > { %v730_v46 = vmax.f32 %v684_v44, 0.0 }
 0x15b   : > { %v734_v47 = vpack.c.bf16 %v730_v46, %v728_v45 }
 0x15d   : > { %881 = vmatmul.bf16.gmra.mxu2 %v734_v47 }
 0x1ca   : > { %v896_v48 = vpop.f32.mrf.mxu3 }
 0x1d0   : > { %v877_v50 = vpop.f32.mrf.mxu2 }
 0x1d1   : > { %v878_v51 = vadd.f32 %v1315_v49, %v877_v50 }
 0x1d2   : > { %v898_v53 = vpop.f32.mrf.mxu3 }
 0x1d3   : > { %v897_v52 = vadd.f32 %v896_v48, %v878_v51 }
 0x1d5   : > { %906 = vst [vmem:[%s280_s10] sm:$0xff] %v897_v52 }
 0x1d8   : > { %v879_v54 = vpop.f32.mrf.mxu2 }
 0x1d9   : > { %v880_v55 = vadd.f32 %v1315_v49, %v879_v54 }
 0x1da   : > { %v901_v57 = vpop.f32.mrf.mxu3 }
 0x1db   : > { %v899_v56 = vadd.f32 %v898_v53, %v880_v55 }
 0x1dd   : > { %907 = vst [vmem:[%s280_s10 + $0x8] sm:$0xff] %v899_v56 }
 0x1e0   : > { %v882_v58 = vpop.f32.mrf.mxu2 }
 0x1e1   : > { %v883_v59 = vadd.f32 %v1315_v49, %v882_v58 }
 0x1e2   : > { %v903_v63 = vpop.f32.mrf.mxu3 }
 0x1e3   : > { %v902_v60 = vadd.f32 %v901_v57, %v883_v59 }
 0x1e5   : > { %908 = vst [vmem:[%s280_s10 + $0x10] sm:$0xff] %v902_v60 }
 0x1e8   : > { %v884_v61 = vpop.f32.mrf.mxu2 }
 0x1e9   : > { %v885_v62 = vadd.f32 %v1315_v49, %v884_v61 }
 0x1eb   : > { %v904_v0 = vadd.f32 %v903_v63, %v885_v62 }
 0x1ed   : > { %909 = vst [vmem:[%s280_s10 + $0x18] sm:$0xff] %v904_v0 }
 0x1ee PF: > { %s17_s24 = sadd.s32 1, %s1322_s24  }
 0x1ef   : > { %p14_p4 = scmp.ge.s32.totalorder %s17_s24, 4  }
 0x1f1   :  { %16 = sbr.rel (!%p14_p4) target bundleno = 1 (0x1), region = 78 }

</bundles_post_ra>
